<compile_context>
chip_gen: v5e
topology: v5e:2x2
jax: 0.10.0
libtpu: 0.0.40
codegen_flags: <defaults>
</compile_context>

<pallas_src>
import math

import numpy as np
import jax
import jax.numpy as jnp
from jax.experimental import pallas as pl
from jax.experimental.pallas import tpu as pltpu

# ----------------------------- tunables -------------------------------------
_MAX_INFLIGHT_DMAS = 8            # DMA-semaphore ring size / in-flight cap
_TARGET_CHUNK_BYTES = 2 << 20     # ~2 MiB per DMA chunk on large inputs
_SPLIT_THRESHOLD_BYTES = 1 << 20  # inputs smaller than this stay one DMA
_MIN_CHUNKS_PER_INPUT = 4         # aim for >= this many chunks on big inputs
_DEFAULT_FALLBACK_BYTES = 1 << 20  # below this, jnp.concatenate is cheaper


def _padded_hbm_bytes(shape, dtype):
    """Approximate tiled-HBM footprint: minor dim pads to 128 lanes, the
    second-minor dim pads to the sublane multiple for this dtype."""
    itemsize = int(np.dtype(dtype).itemsize)
    shape = tuple(int(s) for s in shape)
    if len(shape) < 2:
        n = int(np.prod(shape)) if shape else 1
        return n * itemsize
    sublane = 8 * max(1, 4 // itemsize)            # 8 for f32, 16 for bf16, ...
    lead = int(np.prod(shape[:-2])) if len(shape) > 2 else 1
    h = -(-shape[-2] // sublane) * sublane
    w = -(-shape[-1] // 128) * 128
    return lead * h * w * itemsize


def _build_chunk_plan(channels, offsets, padded_bytes_per_channel):
    """Static chunk plan: (input_idx, src_c0, src_c1, dst_c0, dst_c1)."""
    plan = []
    for i, c_i in enumerate(channels):
        if c_i == 0:
            continue
        input_bytes = c_i * padded_bytes_per_channel
        if input_bytes <= _SPLIT_THRESHOLD_BYTES:
            cpc = c_i                               # small input: one DMA
        else:
            # ~_TARGET_CHUNK_BYTES per chunk, but at least
            # _MIN_CHUNKS_PER_INPUT chunks for DMA concurrency.
            cpc = max(1, _TARGET_CHUNK_BYTES // padded_bytes_per_channel)
            cpc = int(min(cpc, max(1, math.ceil(c_i / _MIN_CHUNKS_PER_INPUT))))
        c0 = 0
        while c0 < c_i:
            c1 = min(c_i, c0 + cpc)
            plan.append((i, c0, c1, offsets[i] + c0, offsets[i] + c1))
            c0 = c1
    # Largest chunks first -> shorter tail when draining the window.
    plan.sort(key=lambda t: t[2] - t[1], reverse=True)
    return plan


def _make_concat_dma_kernel(plan, n_in, max_inflight):
    """Pure-DMA kernel: start chunk copies through a sliding semaphore ring."""

    def kernel(*refs):
        in_refs = refs[:n_in]          # raw HBM refs (memory_space=pl.ANY)
        out_ref = refs[n_in]           # raw HBM ref
        sem = refs[n_in + 1]           # SemaphoreType.DMA((max_inflight,))

        copies = []
        for idx, (i, c0, c1, d0, d1) in enumerate(plan):
            slot = idx % max_inflight
            if idx >= max_inflight:
                # Sliding window: retire the DMA that used this semaphore
                # slot before reusing it.  Caps in-flight descriptors.
                copies[idx - max_inflight].wait()
            cp = pltpu.make_async_copy(
                in_refs[i].at[:, c0:c1, :, :],      # source channel chunk
                out_ref.at[:, d0:d1, :, :],         # destination channel slab
                sem.at[slot],
            )
            cp.start()
            copies.append(cp)

        # Drain the chunks still in flight.
        tail = min(max_inflight, len(copies))
        for cp in copies[len(copies) - tail:]:
            cp.wait()

    return kernel


def concat_pallas(xs, dimension=1, *, min_pallas_bytes=_DEFAULT_FALLBACK_BYTES):
    """Equivalent of torch.cat(xs, dim=1) for NCHW inputs.

    xs: sequence of arrays with identical (N, H, W) and possibly different C.
    min_pallas_bytes: concats smaller than this (padded HBM footprint) fall
        back to jnp.concatenate; set to 0 to force the Pallas DMA path.
    """
    xs = list(xs)
    if not xs:
        raise ValueError("concat_pallas needs at least one input tensor")
    if len(xs) == 1:
        return xs[0]                    # zero-copy fast path
    assert dimension == 1, "this kernel implements channel concat (dim=1)"

    N, _, H, W = xs[0].shape
    dtype = xs[0].dtype
    for x in xs:
        assert x.ndim == 4
        assert x.shape[0] == N and x.shape[2] == H and x.shape[3] == W
        assert x.dtype == dtype

    channels = [int(x.shape[1]) for x in xs]
    c_total = int(sum(channels))
    offsets = [0]
    for c in channels:
        offsets.append(offsets[-1] + c)

    # Real HBM traffic per channel includes tiled-layout padding of (H, W).
    padded_bytes_per_channel = N * _padded_hbm_bytes((H, W), dtype)
    padded_total = c_total * padded_bytes_per_channel

    # Tiny concats: pallas_call launch + per-DMA fixed cost dominates.
    if padded_total < min_pallas_bytes:
        return jnp.concatenate(xs, axis=dimension)

    plan = _build_chunk_plan(channels, offsets, padded_bytes_per_channel)
    max_inflight = max(1, min(_MAX_INFLIGHT_DMAS, len(plan)))
    kernel = _make_concat_dma_kernel(plan, len(xs), max_inflight)

    out = pl.pallas_call(
        kernel,
        out_shape=jax.ShapeDtypeStruct((N, c_total, H, W), dtype),
        # Pure-DMA kernel: leave every operand in HBM; no auto block DMA,
        # no grid, no VMEM tiles -> no (8,128) or VMEM-budget constraints.
        in_specs=[pl.BlockSpec(memory_space=pl.ANY) for _ in xs],
        out_specs=pl.BlockSpec(memory_space=pl.ANY),
        scratch_shapes=[pltpu.SemaphoreType.DMA((max_inflight,))],
        compiler_params=pltpu.CompilerParams(has_side_effects=True),
        # Advisory: read each (padded) byte once, write once.
        cost_estimate=pl.CostEstimate(
            flops=0, transcendentals=0, bytes_accessed=2 * padded_total),
    )(*xs)

    return out


if __name__ == "__main__":
    key = jax.random.PRNGKey(0)
    k1, k2, k3, k4, k5 = jax.random.split(key, 5)

    # --- Test 1: typical YOLO Concat shapes, forced through the Pallas path.
    x1 = jax.random.normal(k1, (2, 4, 16, 16), dtype=jnp.float32)
    x2 = jax.random.normal(k2, (2, 8, 16, 16), dtype=jnp.float32)
    x3 = jax.random.normal(k3, (2, 4, 16, 16), dtype=jnp.float32)

    out = concat_pallas([x1, x2, x3], dimension=1, min_pallas_bytes=0)
    out = jax.block_until_ready(out)
    ref = jnp.concatenate([x1, x2, x3], axis=1)
    assert out.shape == ref.shape, (out.shape, ref.shape)
    np.testing.assert_allclose(np.asarray(out), np.asarray(ref), atol=0, rtol=0)

    # --- Test 2: larger channel counts -> chunked copies + sliding DMA window.
    y1 = jax.random.normal(k4, (2, 96, 16, 16), dtype=jnp.float32)
    y2 = jax.random.normal(k5, (2, 80, 16, 16), dtype=jnp.float32)
    out2 = concat_pallas([y1, y2], dimension=1, min_pallas_bytes=0)
    out2 = jax.block_until_ready(out2)
    ref2 = jnp.concatenate([y1, y2], axis=1)
    np.testing.assert_allclose(np.asarray(out2), np.asarray(ref2), atol=0, rtol=0)

    # --- Test 3: fast paths (single input zero-copy; tiny-concat fallback).
    single = concat_pallas([x1], dimension=1)
    np.testing.assert_allclose(np.asarray(single), np.asarray(x1), atol=0, rtol=0)
    small = jax.block_until_ready(concat_pallas([x1, x3], dimension=1))
    np.testing.assert_allclose(
        np.asarray(small), np.asarray(jnp.concatenate([x1, x3], axis=1)),
        atol=0, rtol=0)

    print("KERNEL_OK")
</pallas_src>

<mosaic_0001>
module attributes {stable_mosaic.version = 11 : i64} {
  func.func @kernel(%arg0: memref<2x4x16x16xf32, #tpu.memory_space<any>>, %arg1: memref<2x8x16x16xf32, #tpu.memory_space<any>>, %arg2: memref<2x4x16x16xf32, #tpu.memory_space<any>>, %arg3: memref<2x16x16x16xf32, #tpu.memory_space<any>>, %arg4: memref<3x!tpu.dma_semaphore, #tpu.memory_space<semaphore_mem>>) attributes {dimension_semantics = [], scalar_prefetch = 0 : i64, scratch_operands = 1 : i64, tpu.core_type = #tpu.core_type<tc>} {
    %c0_i32 = arith.constant 0 : i32
    %c0_i32_0 = arith.constant 0 : i32
    %c0_i32_1 = arith.constant 0 : i32
    %c0_i32_2 = arith.constant 0 : i32
    %c0_i32_3 = arith.constant 0 : i32
    %0 = tpu.memref_slice %arg1[%c0_i32_0, %c0_i32_1, %c0_i32_2, %c0_i32_3] : memref<2x8x16x16xf32, #tpu.memory_space<any>> -> memref<2x8x16x16xf32, #tpu.memory_space<any>>
    %c0_i32_4 = arith.constant 0 : i32
    %c4_i32 = arith.constant 4 : i32
    %c0_i32_5 = arith.constant 0 : i32
    %c0_i32_6 = arith.constant 0 : i32
    %1 = tpu.memref_slice %arg3[%c0_i32_4, %c4_i32, %c0_i32_5, %c0_i32_6] : memref<2x16x16x16xf32, #tpu.memory_space<any>> -> memref<2x8x16x16xf32, #tpu.memory_space<any>>
    %2 = tpu.memref_slice %arg4[%c0_i32] : memref<3x!tpu.dma_semaphore, #tpu.memory_space<semaphore_mem>> -> memref<1x!tpu.dma_semaphore, #tpu.memory_space<semaphore_mem>>
    %3 = tpu.memref_squeeze %2 : memref<1x!tpu.dma_semaphore, #tpu.memory_space<semaphore_mem>> -> memref<!tpu.dma_semaphore, #tpu.memory_space<semaphore_mem>>
    tpu.enqueue_dma source(%0 : memref<2x8x16x16xf32, #tpu.memory_space<any>>) target(%1 : memref<2x8x16x16xf32, #tpu.memory_space<any>>) target_semaphore(%3 : memref<!tpu.dma_semaphore, #tpu.memory_space<semaphore_mem>>)
    %c1_i32 = arith.constant 1 : i32
    %c0_i32_7 = arith.constant 0 : i32
    %c0_i32_8 = arith.constant 0 : i32
    %c0_i32_9 = arith.constant 0 : i32
    %c0_i32_10 = arith.constant 0 : i32
    %4 = tpu.memref_slice %arg0[%c0_i32_7, %c0_i32_8, %c0_i32_9, %c0_i32_10] : memref<2x4x16x16xf32, #tpu.memory_space<any>> -> memref<2x4x16x16xf32, #tpu.memory_space<any>>
    %c0_i32_11 = arith.constant 0 : i32
    %c0_i32_12 = arith.constant 0 : i32
    %c0_i32_13 = arith.constant 0 : i32
    %c0_i32_14 = arith.constant 0 : i32
    %5 = tpu.memref_slice %arg3[%c0_i32_11, %c0_i32_12, %c0_i32_13, %c0_i32_14] : memref<2x16x16x16xf32, #tpu.memory_space<any>> -> memref<2x4x16x16xf32, #tpu.memory_space<any>>
    %6 = tpu.memref_slice %arg4[%c1_i32] : memref<3x!tpu.dma_semaphore, #tpu.memory_space<semaphore_mem>> -> memref<1x!tpu.dma_semaphore, #tpu.memory_space<semaphore_mem>>
    %7 = tpu.memref_squeeze %6 : memref<1x!tpu.dma_semaphore, #tpu.memory_space<semaphore_mem>> -> memref<!tpu.dma_semaphore, #tpu.memory_space<semaphore_mem>>
    tpu.enqueue_dma source(%4 : memref<2x4x16x16xf32, #tpu.memory_space<any>>) target(%5 : memref<2x4x16x16xf32, #tpu.memory_space<any>>) target_semaphore(%7 : memref<!tpu.dma_semaphore, #tpu.memory_space<semaphore_mem>>)
    %c2_i32 = arith.constant 2 : i32
    %c0_i32_15 = arith.constant 0 : i32
    %c0_i32_16 = arith.constant 0 : i32
    %c0_i32_17 = arith.constant 0 : i32
    %c0_i32_18 = arith.constant 0 : i32
    %8 = tpu.memref_slice %arg2[%c0_i32_15, %c0_i32_16, %c0_i32_17, %c0_i32_18] : memref<2x4x16x16xf32, #tpu.memory_space<any>> -> memref<2x4x16x16xf32, #tpu.memory_space<any>>
    %c0_i32_19 = arith.constant 0 : i32
    %c12_i32 = arith.constant 12 : i32
    %c0_i32_20 = arith.constant 0 : i32
    %c0_i32_21 = arith.constant 0 : i32
    %9 = tpu.memref_slice %arg3[%c0_i32_19, %c12_i32, %c0_i32_20, %c0_i32_21] : memref<2x16x16x16xf32, #tpu.memory_space<any>> -> memref<2x4x16x16xf32, #tpu.memory_space<any>>
    %10 = tpu.memref_slice %arg4[%c2_i32] : memref<3x!tpu.dma_semaphore, #tpu.memory_space<semaphore_mem>> -> memref<1x!tpu.dma_semaphore, #tpu.memory_space<semaphore_mem>>
    %11 = tpu.memref_squeeze %10 : memref<1x!tpu.dma_semaphore, #tpu.memory_space<semaphore_mem>> -> memref<!tpu.dma_semaphore, #tpu.memory_space<semaphore_mem>>
    tpu.enqueue_dma source(%8 : memref<2x4x16x16xf32, #tpu.memory_space<any>>) target(%9 : memref<2x4x16x16xf32, #tpu.memory_space<any>>) target_semaphore(%11 : memref<!tpu.dma_semaphore, #tpu.memory_space<semaphore_mem>>)
    %c0_i32_22 = arith.constant 0 : i32
    %c0_i32_23 = arith.constant 0 : i32
    %c0_i32_24 = arith.constant 0 : i32
    %c0_i32_25 = arith.constant 0 : i32
    %c0_i32_26 = arith.constant 0 : i32
    %12 = tpu.memref_slice %arg1[%c0_i32_23, %c0_i32_24, %c0_i32_25, %c0_i32_26] : memref<2x8x16x16xf32, #tpu.memory_space<any>> -> memref<2x8x16x16xf32, #tpu.memory_space<any>>
    %c0_i32_27 = arith.constant 0 : i32
    %c4_i32_28 = arith.constant 4 : i32
    %c0_i32_29 = arith.constant 0 : i32
    %c0_i32_30 = arith.constant 0 : i32
    %13 = tpu.memref_slice %arg3[%c0_i32_27, %c4_i32_28, %c0_i32_29, %c0_i32_30] : memref<2x16x16x16xf32, #tpu.memory_space<any>> -> memref<2x8x16x16xf32, #tpu.memory_space<any>>
    %14 = tpu.memref_slice %arg4[%c0_i32_22] : memref<3x!tpu.dma_semaphore, #tpu.memory_space<semaphore_mem>> -> memref<1x!tpu.dma_semaphore, #tpu.memory_space<semaphore_mem>>
    %15 = tpu.memref_squeeze %14 : memref<1x!tpu.dma_semaphore, #tpu.memory_space<semaphore_mem>> -> memref<!tpu.dma_semaphore, #tpu.memory_space<semaphore_mem>>
    tpu.wait_dma2 semaphore(%15 : memref<!tpu.dma_semaphore, #tpu.memory_space<semaphore_mem>>) src(%12 : memref<2x8x16x16xf32, #tpu.memory_space<any>>) dst(%13 : memref<2x8x16x16xf32, #tpu.memory_space<any>>)
    %c1_i32_31 = arith.constant 1 : i32
    %c0_i32_32 = arith.constant 0 : i32
    %c0_i32_33 = arith.constant 0 : i32
    %c0_i32_34 = arith.constant 0 : i32
    %c0_i32_35 = arith.constant 0 : i32
    %16 = tpu.memref_slice %arg0[%c0_i32_32, %c0_i32_33, %c0_i32_34, %c0_i32_35] : memref<2x4x16x16xf32, #tpu.memory_space<any>> -> memref<2x4x16x16xf32, #tpu.memory_space<any>>
    %c0_i32_36 = arith.constant 0 : i32
    %c0_i32_37 = arith.constant 0 : i32
    %c0_i32_38 = arith.constant 0 : i32
    %c0_i32_39 = arith.constant 0 : i32
    %17 = tpu.memref_slice %arg3[%c0_i32_36, %c0_i32_37, %c0_i32_38, %c0_i32_39] : memref<2x16x16x16xf32, #tpu.memory_space<any>> -> memref<2x4x16x16xf32, #tpu.memory_space<any>>
    %18 = tpu.memref_slice %arg4[%c1_i32_31] : memref<3x!tpu.dma_semaphore, #tpu.memory_space<semaphore_mem>> -> memref<1x!tpu.dma_semaphore, #tpu.memory_space<semaphore_mem>>
    %19 = tpu.memref_squeeze %18 : memref<1x!tpu.dma_semaphore, #tpu.memory_space<semaphore_mem>> -> memref<!tpu.dma_semaphore, #tpu.memory_space<semaphore_mem>>
    tpu.wait_dma2 semaphore(%19 : memref<!tpu.dma_semaphore, #tpu.memory_space<semaphore_mem>>) src(%16 : memref<2x4x16x16xf32, #tpu.memory_space<any>>) dst(%17 : memref<2x4x16x16xf32, #tpu.memory_space<any>>)
    %c2_i32_40 = arith.constant 2 : i32
    %c0_i32_41 = arith.constant 0 : i32
    %c0_i32_42 = arith.constant 0 : i32
    %c0_i32_43 = arith.constant 0 : i32
    %c0_i32_44 = arith.constant 0 : i32
    %20 = tpu.memref_slice %arg2[%c0_i32_41, %c0_i32_42, %c0_i32_43, %c0_i32_44] : memref<2x4x16x16xf32, #tpu.memory_space<any>> -> memref<2x4x16x16xf32, #tpu.memory_space<any>>
    %c0_i32_45 = arith.constant 0 : i32
    %c12_i32_46 = arith.constant 12 : i32
    %c0_i32_47 = arith.constant 0 : i32
    %c0_i32_48 = arith.constant 0 : i32
    %21 = tpu.memref_slice %arg3[%c0_i32_45, %c12_i32_46, %c0_i32_47, %c0_i32_48] : memref<2x16x16x16xf32, #tpu.memory_space<any>> -> memref<2x4x16x16xf32, #tpu.memory_space<any>>
    %22 = tpu.memref_slice %arg4[%c2_i32_40] : memref<3x!tpu.dma_semaphore, #tpu.memory_space<semaphore_mem>> -> memref<1x!tpu.dma_semaphore, #tpu.memory_space<semaphore_mem>>
    %23 = tpu.memref_squeeze %22 : memref<1x!tpu.dma_semaphore, #tpu.memory_space<semaphore_mem>> -> memref<!tpu.dma_semaphore, #tpu.memory_space<semaphore_mem>>
    tpu.wait_dma2 semaphore(%23 : memref<!tpu.dma_semaphore, #tpu.memory_space<semaphore_mem>>) src(%20 : memref<2x4x16x16xf32, #tpu.memory_space<any>>) dst(%21 : memref<2x4x16x16xf32, #tpu.memory_space<any>>)
    return
  }
}

</mosaic_0001>

<bundles_post_ra>
// kernel: tpu_custom_call.1
= control target key start
LH: loop header
LB: loop body
LE: loop exit
PB: predicated region body
PF: predicated region fallthrough
CT: control target
= control target key end

     0   :  { %s119_s19 = smov 2048   ;;  %s120_s20 = smov 4096   ;;  %s169_s0 = inlined_call_operand.hbm [shape: f32[2,4,16,16], index: 0, kind: input, shape index: {}]   ;;  %s170_s1 = inlined_call_operand.hbm [shape: f32[2,8,16,16], index: 1, kind: input, shape index: {}]   ;;  %s171_s2 = inlined_call_operand.hbm [shape: f32[2,4,16,16], index: 2, kind: input, shape index: {}]   ;;  %s172_s3 = inlined_call_operand.hbm [shape: f32[2,16,16,16], index: 3, kind: output, shape index: {}]  }
   0x1   :  { %s8_s14 = scalar_lea.hbm %s172_s3, 64  ;;  %s13_s17 = sshll.u32 %s170_s1, 4  ;;  %s14_s17 = int_to_ptr.hbm [resolvable:$true] %s13_s17 }
   0x2   :  { %s15_s18 = sshll.u32 %s8_s14, 4  ;;  %20 = sst [smem:[#allocation4]] %s119_s19  ;;  %s16_s18 = int_to_ptr.hbm [resolvable:$true] %s15_s18 }
   0x3   :  { %22 = sst [smem:[#allocation4 + $0x1]] %s120_s20  ;;  %s121_s21 = smov 128  }
   0x4   :  { %24 = sst [smem:[#allocation4 + $0x2]] %s121_s21  ;;  %s122_s22 = smov [#allocation2]  }
   0x5   :  { %s123_s23 = smov [#allocation3]   ;;  %s124_s24 = smov 0  }
   0x6   :  { %26 = dma.general %s14_s17, 4096, %s16_s18, %s122_s22, %s123_s23, [#allocation4], %s124_s24, 0  }
   0x7   :  { %41 = sst [smem:[#allocation6 + $0x1]] %s120_s20  ;;  %s125_s25 = smov 1024  }
   0x8   :  { %39 = sst [smem:[#allocation6]] %s125_s25  ;;  %s126_s26 = smov 64  }
   0x9   :  { %43 = sst [smem:[#allocation6 + $0x2]] %s126_s26  ;;  %s32_s28 = sshll.u32 %s169_s0, 4  ;;  %s33_s28 = int_to_ptr.hbm [resolvable:$true] %s32_s28 }
   0xa   :  { %s34_s4 = sshll.u32 %s172_s3, 4  ;;  %s46_s7 = scalar_lea.hbm %s172_s3, 192  ;;  %s35_s4 = int_to_ptr.hbm [resolvable:$true] %s34_s4 }
   0xb   :  { %s127_s8 = smov [#allocation2 + $0x1]   ;;  %s128_s9 = smov [#allocation5]  }
   0xc   :  { %45 = dma.general %s33_s28, 2048, %s35_s4, %s127_s8, %s128_s9, [#allocation6], %s124_s24, 0  }
   0xd   :  { %59 = sst [smem:[#allocation8]] %s125_s25  ;;  %s52_s12 = sshll.u32 %s171_s2, 4  ;;  %s53_s12 = int_to_ptr.hbm [resolvable:$true] %s52_s12 }
   0xe   :  { %61 = sst [smem:[#allocation8 + $0x1]] %s120_s20  ;;  %s54_s0 = sshll.u32 %s46_s7, 4  ;;  %s55_s0 = int_to_ptr.hbm [resolvable:$true] %s54_s0 }
   0xf   :  { %63 = sst [smem:[#allocation8 + $0x2]] %s126_s26  ;;  %s129_s13 = smov [#allocation2 + $0x2]  }
  0x10   :  { %s130_s14 = smov [#allocation7]  }
  0x11   :  { %65 = dma.general %s53_s12, 2048, %s55_s0, %s129_s13, %s130_s14, [#allocation8], %s124_s24, 0  }
  0x12   :  { %113 = dma.done.wait [#allocation2], 4096 }
  0x13   :  { %114 = vsyncadd [#allocation2], 4294963200 }
  0x14   :  { %115 = dma.done.wait [#allocation2 + $0x1], 2048 }
  0x15   :  { %116 = vsyncadd [#allocation2 + $0x1], 4294965248 }
  0x16   :  { %117 = dma.done.wait [#allocation2 + $0x2], 2048 }
  0x17   :  { %118 = vsyncadd [#allocation2 + $0x2], 4294965248 }
  0x18   :  { %78 = vsyncmov [#allocation2] }
  0x1b   :  { %s79_s3 = vpop.sfrf %78 }
  0x1c   :  { %p98_p0 = scmp.ne.s32.totalorder %s79_s3, 0 }
  0x1e   :  { %83 = shalt.err (%p98_p0)  }
  0x1f   :  { %85 = vsyncmov [#allocation2 + $0x1] }
  0x22   :  { %s86_s2 = vpop.sfrf %85 }
  0x23   :  { %p99_p1 = scmp.ne.s32.totalorder %s86_s2, 0 }
  0x25   :  { %90 = shalt.err (%p99_p1)  }
  0x26   :  { %92 = vsyncmov [#allocation2 + $0x2] }
  0x29   :  { %s93_s15 = vpop.sfrf %92 }
  0x2a   :  { %p100_p2 = scmp.ne.s32.totalorder %s93_s15, 0 }
  0x2c   :  { %97 = shalt.err (%p100_p2)  }

</bundles_post_ra>
